<compile_context>
chip_gen: v6e
topology: v6e:2x2x1
jax: 0.10.0
libtpu: 0.0.40
codegen_flags: <defaults>
</compile_context>

<pallas_src>
import jax
import jax.numpy as jnp
from jax.experimental import pallas as pl
from jax.experimental.pallas import tpu as pltpu


def _projector_kernel(w_ref, x_ref, o_ref):
    # w_ref: (O, C) resident weight; x_ref: (C, TS) lane tile; o_ref: (O, TS).
    # One lane-dense MXU matmul per grid step; f32 accumulation.
    o_ref[...] = jnp.dot(
        w_ref[...], x_ref[...], preferred_element_type=jnp.float32
    ).astype(o_ref.dtype)


def _pick_lane_tile(wh, n, c, o, dsize, *, vmem_budget_bytes=16 << 20, max_tile=32768):
    """Lane tile: multiple of 128, large enough to amortize per-step overhead,
    small enough that the double-buffered (C+O) tiles stay well under v7x VMEM."""
    per_lane = 2 * (c + o) * dsize  # double-buffered input + output bytes per lane
    ts = (vmem_budget_bytes // per_lane) // 128 * 128
    ts = max(128, min(int(ts), max_tile))
    wh128 = pl.cdiv(wh, 128) * 128
    ts = min(ts, wh128)
    # Prefer >= 4 grid blocks so both v7x TensorCores get balanced work.
    while ts > 128 and n * pl.cdiv(wh, ts) < 4:
        ts = max(128, (ts // 2) // 128 * 128)
    return ts


def projector_block(x, weight):
    """1x1 Conv2d with no bias (PyTorch ProjectorBlock.forward).

    x:      (N, C, H, W)
    weight: (O, C, 1, 1) or (O, C)   (PyTorch Conv2d weight layout)
    Returns (N, O, H, W) in x.dtype.
    """
    N, C, H, W = x.shape
    O = weight.shape[0]
    dtype = x.dtype
    w2d = weight.reshape(O, C).astype(dtype)  # tiny, resident in VMEM

    WH = H * W
    x3 = x.reshape(N, C, WH)  # free reshape, no transpose / copy

    dsize = jnp.dtype(dtype).itemsize
    ts = _pick_lane_tile(WH, N, C, O, dsize)
    n_s = pl.cdiv(WH, ts)
    grid = (N, n_s)

    # VMEM: double-buffered input/output tiles + resident weight, with headroom,
    # capped at 32 MiB so the same code is safe on v7x (64 MiB physical VMEM).
    est = dsize * (2 * (C + O) * ts + 2 * O * C)
    vmem_limit = int(min(max(4 * est, 8 << 20), 32 << 20))

    cost = pl.CostEstimate(
        flops=2 * O * C * N * WH,
        transcendentals=0,
        bytes_accessed=dsize * (N * C * WH + O * C + N * O * WH),
    )

    out = pl.pallas_call(
        _projector_kernel,
        out_shape=jax.ShapeDtypeStruct((N, O, WH), dtype),
        grid_spec=pltpu.PrefetchScalarGridSpec(
            num_scalar_prefetch=0,
            grid=grid,
            in_specs=[
                # Projection weight: constant index_map -> fetched once, resident.
                pl.BlockSpec((O, C), lambda n, s: (0, 0)),
                # NCHW-native input tile: (C, ts) slab of sample n.
                pl.BlockSpec((pl.Squeezed(), C, ts), lambda n, s: (n, 0, s)),
            ],
            # Lane-dense output slab (last dim = ts >= 128, unmasked stores).
            out_specs=pl.BlockSpec((pl.Squeezed(), O, ts), lambda n, s: (n, 0, s)),
        ),
        compiler_params=pltpu.CompilerParams(
            dimension_semantics=("parallel", "parallel"),
            vmem_limit_bytes=vmem_limit,
        ),
        cost_estimate=cost,
    )(w2d, x3)

    return out.reshape(N, O, H, W)


def reference(x, weight):
    """Pure-JAX port of the PyTorch forward (high-precision contraction)."""
    O, C = weight.shape[0], weight.shape[1]
    w2d = weight.reshape(O, C)
    return jnp.einsum("oc,nchw->nohw", w2d, x, precision="highest").astype(x.dtype)


if __name__ == "__main__":
    N, C, H, W = 2, 4, 16, 16
    O = 32  # out_features of the projector

    key = jax.random.PRNGKey(0)
    k1, k2 = jax.random.split(key, 2)

    x = jax.random.normal(k1, (N, C, H, W), jnp.float32)
    # PyTorch-default-style uniform init for Conv2d weight (O, C, 1, 1), no bias.
    bound = 1.0 / (C ** 0.5)
    conv_w = jax.random.uniform(k2, (O, C, 1, 1), jnp.float32, -bound, bound)

    out = projector_block(x, conv_w)
    jax.block_until_ready(out)

    out_ref = reference(x, conv_w)
    assert out.shape == (N, O, H, W)
    assert out.dtype == x.dtype
    assert jnp.allclose(out, out_ref, atol=5e-3, rtol=5e-3), "projector output mismatch"

    print("KERNEL_OK")
</pallas_src>

<mosaic_0001>
module attributes {stable_mosaic.version = 11 : i64} {
  func.func @_projector_kernel(%arg0: i32, %arg1: i32, %arg2: memref<32x4xf32, #tpu.memory_space<vmem>>, %arg3: memref<1x4x128xf32, #tpu.memory_space<vmem>>, %arg4: memref<1x32x128xf32, #tpu.memory_space<vmem>>) attributes {dimension_semantics = [#tpu.dimension_semantics<parallel>, #tpu.dimension_semantics<parallel>], iteration_bounds = array<i64: 2, 2>, scalar_prefetch = 0 : i64, scratch_operands = 0 : i64, tpu.core_type = #tpu.core_type<tc>, window_params = [{pipeline_mode = #tpu.pipeline_mode<synchronous>, transform_indices = @transform_0, window_bounds = array<i64: 32, 4>}, {transform_indices = @transform_1, window_bounds = array<i64: 1, 4, 128>}, {transform_indices = @transform_2, window_bounds = array<i64: 1, 32, 128>}]} {
    %c0 = arith.constant 0 : index
    %c0_0 = arith.constant 0 : index
    %0 = vector.load %arg2[%c0, %c0_0] : memref<32x4xf32, #tpu.memory_space<vmem>>, vector<32x4xf32>
    %c0_1 = arith.constant 0 : index
    %c0_2 = arith.constant 0 : index
    %c0_3 = arith.constant 0 : index
    %1 = vector.load %arg3[%c0_1, %c0_2, %c0_3] : memref<1x4x128xf32, #tpu.memory_space<vmem>>, vector<1x4x128xf32>
    %2 = vector.shape_cast %1 : vector<1x4x128xf32> to vector<4x128xf32>
    %cst = arith.constant dense<0.000000e+00> : vector<32x128xf32>
    %3 = tpu.matmul %0, %2, %cst {dimension_numbers = #tpu.dot_dimension_numbers<[1], [0], [0], [1], [0, 0, 1, 1], [], []>} : vector<32x4xf32>, vector<4x128xf32>, vector<32x128xf32> -> vector<32x128xf32>
    %c0_4 = arith.constant 0 : index
    %c0_5 = arith.constant 0 : index
    %c0_6 = arith.constant 0 : index
    %4 = vector.load %arg4[%c0_4, %c0_5, %c0_6] : memref<1x32x128xf32, #tpu.memory_space<vmem>>, vector<1x32x128xf32>
    %5 = vector.shape_cast %4 : vector<1x32x128xf32> to vector<32x128xf32>
    %6 = vector.shape_cast %3 : vector<32x128xf32> to vector<1x32x128xf32>
    tpu.vector_store %arg4[%c0_4, %c0_5, %c0_6], %6 {strides = array<i32>} : memref<1x32x128xf32, #tpu.memory_space<vmem>>, vector<1x32x128xf32>,
    return
  }
  func.func @transform_0(%arg0: i32, %arg1: i32) -> (i32, i32) {
    %c0_i32 = arith.constant 0 : i32
    %c0_i32_0 = arith.constant 0 : i32
    %c0_i32_1 = arith.constant 0 : i32
    return %c0_i32, %c0_i32_0 : i32, i32
  }
  func.func @transform_1(%arg0: i32, %arg1: i32) -> (i32, i32, i32) {
    %c0_i32 = arith.constant 0 : i32
    %c0_i32_0 = arith.constant 0 : i32
    return %arg0, %c0_i32, %arg1 : i32, i32, i32
  }
  func.func @transform_2(%arg0: i32, %arg1: i32) -> (i32, i32, i32) {
    %c0_i32 = arith.constant 0 : i32
    %c0_i32_0 = arith.constant 0 : i32
    return %arg0, %c0_i32, %arg1 : i32, i32, i32
  }
}

</mosaic_0001>

<bundles_post_ra>
// kernel: tpu_custom_call.1
= control target key start
LH: loop header
LB: loop body
LE: loop exit
PB: predicated region body
PF: predicated region fallthrough
CT: control target
= control target key end

     0   :  { %7 = vsyncpa [#allocation3], 0  ;;  %s749_s0 = inlined_call_operand.vmem [shape: f32[32,4], index: 0, kind: input, shape index: {}]   ;;  %s750_s1 = inlined_call_operand.vmem [shape: f32[2,4,256], index: 1, kind: input, shape index: {}]   ;;  %s751_s2 = inlined_call_operand.hbm [shape: f32[2,32,256], index: 2, kind: output, shape index: {}]  }
   0x1   :  { %9 = vsyncpa [#allocation3 + $0x1], 0  ;;  %s594_s9 = smov 0   ;;  %s596_s10 = smov 0  }
   0x2   :  { %s598_s11 = smov 0   ;;  %s600_s12 = smov 0  }
   0x3   :  { %s602_s13 = smov 0   ;;  %s604_s14 = smov 0  }
   0x4   :  { %s606_s15 = smov 0   ;;  %s608_s16 = smov 0  }
   0x5 LB: > { %s374_s17 = sadd.s32 4294967295, %s573_s16   ;;  %s375_s18 = sadd.s32 4294967294, %s573_s16   ;;  %s573_s16 = sphi %s608_s16, %s15_s16   ;;  %s569_s15 = sphi %s606_s15, %s760_s15   ;;  %s565_s14 = sphi %s604_s14, %s759_s14   ;;  %s561_s13 = sphi %s602_s13, %s758_s13   ;;  %s557_s12 = sphi %s600_s12, %s757_s12   ;;  %s553_s11 = sphi %s598_s11, %s756_s11   ;;  %s549_s10 = sphi %s596_s10, %s755_s10   ;;  %s545_s9 = sphi %s594_s9, %s754_s9  }
   0x6   : > { %s24_s19 = sadd.s32 1, %s565_s14  ;;  %s27_s20 = sadd.s32 1, %s569_s15 }
   0x7   : > { %p25_p0 = scmp.ge.s32.totalorder %s24_s19, 2  ;;  %p95_p1 = scmp.ne.s32.totalorder %s553_s11, %s549_s10 }
   0x8   : > { %p96_p2 = scmp.eq.s32.totalorder %s374_s17, 3  ;;  %p101_p5 = scmp.ne.s32.totalorder %s549_s10, %s545_s9 }
   0x9   : > { %s762_s19 = smov (%p25_p0, %s24_s19), 0  ;;  %s764_s20 = smov (!%p25_p0, %s27_s20), %s569_s15 }
   0xa   : > { %s81_s21 = ssub.s32 %s565_s14, %s762_s19  ;;  %p645_p3 = por %p96_p2, %p95_p1 }
   0xb   : > { %p29_p4 = scmp.ge.s32.totalorder %s764_s20, 2  ;;  %p102_p6 = scmp.eq.s32.totalorder %s375_s18, 3 }
   0xc   : > { %p378_p7 = scmp.ge.s32.totalorder %s573_s16, 1  ;;  %p134_p9 = scmp.lt.s32.totalorder %s573_s16, 5 }
   0xd   : > { %s766_s20 = smov (%p29_p4, %s764_s20), 0  ;;  %p654_p8 = por %p102_p6, %p101_p5 }
   0xe   : > { %s80_s24 = ssub.s32 %s569_s15, %s766_s20  ;;  %s85_s25 = sadd.s32 1, %s553_s11 }
   0xf   : > { %s82_s26 = sor.u32 %s81_s21, %s80_s24  ;;  %p135_p10 = pnand %p378_p7, %p134_p9 }
  0x10   : > { %p83_p11 = scmp.eq.s32.totalorder %s82_s26, 0  ;;  %p159_p12 = scmp.lt.s32.totalorder (!%p135_p10), %s561_s13, 1 }
  0x11   : > { %138 = sbr.rel (%p135_p10) target bundleno = 241 (0xf1), region = 28  ;;  %p161_p13 = scmp.lt.s32.totalorder (!%p135_p10), %s557_s12, 1 }
  0x12   : > { %s663_s27 = scalar_select %p83_p11, %s553_s11, %s85_s25  }
  0x13   : > { %s156_s29 = sand.u32 (!%p135_p10), 1, %s549_s10   ;;  %s388_s3 = sshll.u32 (!%p135_p10), %s561_s13, 3 }
  0x14   : > { %s379_s30 = sshll.u32 (!%p135_p10), %s156_s29, 5 }
  0x16   : > { %v167_v0 = vld [vmem:[%s749_s0] sm:$0xff]  ;;  %vm172_vm0 = vcmask 31744   ;;  %v169_v1 = vld [vmem:[%s749_s0 + $0x10] sm:$0xff]  ;;  %s160_s4 = scalar_select %p159_p12, %s561_s13, 1  ;;  %vm185_vm1 = vcmask 1043456   ;;  %v168_v3 = vld [vmem:[%s749_s0 + $0x8] sm:$0xff] }
  0x17   : > { %399 = vmatprep.mubr.msk.f32.mxu0 %vm172_vm0, %v167_v0  ;;  %402 = vmatprep.mubr.msk.f32.mxu1 %vm172_vm0, %v169_v1  ;;  %s162_s5 = scalar_select %p161_p13, %s557_s12, 1  ;;  %v170_v4 = vld [vmem:[%s749_s0 + $0x18] sm:$0xff] }
  0x18   : > { %s380_s6 = sshll.u32 %s160_s4, 1  ;;  %s290_s4 = sadd.s32 %s557_s12, %s388_s3 }
  0x19   : > { %s164_s7 = sadd.s32 %s380_s6, %s162_s5  ;;  %s158_s5 = scalar_lea.vmem [#allocation2], %s379_s30 }
  0x1a   : > { %s381_s8 = sshll.u32 %s164_s7, 2  ;;  %s293_s6 = sshll.u32 %s158_s5, 4  ;;  %s691_s6 = int_to_ptr.vmem [resolvable:$true] %s293_s6 }
  0x1b   : > { %s166_s21 = scalar_lea.vmem %s750_s1, %s381_s8  ;;  %s389_s7 = sshll.u32 %s290_s4, 7 }
  0x1c   : > { %v171_v2 = vld [vmem:[%s166_s21] sm:$0xf]  ;;  %s696_s18 = scalar_lea.hbm %s751_s2, %s389_s7  ;;  %s698_s12 = scalar_lea.sflag [#allocation3], %s156_s29 }
  0x1d   : > { %397 = vmatprep.subr.msk.mxu0 %vm185_vm1, %v171_v2  ;;  %405 = vmatprep.subr.msk.mxu1 %vm185_vm1, %v171_v2  ;;  %s481_s13 = scalar_lea.vmem %s691_s6, 512  ;;  %s575_s21 = smov [#allocation2]  }
  0x1e   : > { %398 = vmatpush3.msk.msra.mxu0 %vm185_vm1, %v171_v2  ;;  %406 = vmatpush3.msk.msra.mxu1 %vm185_vm1, %v171_v2  ;;  %p482_p0 = scmp.ne.s32.totalorder %s691_s6, %s481_s13  ;;  %s485_s24 = sshll.u32 %s575_s21, 4  ;;  %s486_s24 = int_to_ptr.vmem [resolvable:$false] %s485_s24 }
  0x1f   : > { %400 = vmatmul.mubr.msk.f32.vlgmr.msra.gmra.mxu0 %vm172_vm0, %v168_v3  ;;  %403 = vmatmul.mubr.msk.f32.vlgmr.msra.gmra.mxu1 %vm172_vm0, %v170_v4  ;;  %s487_s25 = scalar_lea.vmem %s486_s24, 1024  ;;  %p488_p4 = scmp.lt.s32.totalorder %s691_s6, %s486_s24 }
  0x20   : > { %p483_p1 = pnand %p482_p0, %p645_p3  ;;  %p489_p5 = scmp.lt.s32.totalorder %s487_s25, %s481_s13 }
  0x22   : > { %p484_p2 = pneg %p483_p1  ;;  %p490_p6 = por %p489_p5, %p488_p4 }
  0x24   : > { %p491_p7 = pnand %p490_p6, %p484_p2 }
  0xdf   : > { %v401_v5 = vpop.f32.mrf.mxu0  ;;  %v404_v6 = vpop.f32.mrf.mxu1 }
  0xe0   : > { %275 = vst [vmem:[%s158_s5 + $0x8] sm:$0xff] %v401_v5  ;;  %277 = vst [vmem:[%s158_s5 + $0x18] sm:$0xff] %v404_v6 }
  0xe1   : > { %v255_v7 = vpop.f32.mrf.mxu0  ;;  %v265_v8 = vpop.f32.mrf.mxu1 }
  0xe2   : > { %274 = vst [vmem:[%s158_s5] sm:$0xff] %v255_v7  ;;  %276 = vst [vmem:[%s158_s5 + $0x10] sm:$0xff] %v265_v8 }
  0xe3   : > { %494 = shalt.err (!%p491_p7)
}
  0xe4   : > { %s495_s26 = scalar_lea.hbm %s696_s18, 512  ;;  %s499_s30 = scalar_lea.hbm %s751_s2, 2048 }
  0xe5   : > { %p496_p9 = scmp.ne.s32.totalorder %s696_s18, %s495_s26  ;;  %p500_p12 = scmp.lt.s32.totalorder %s696_s18, %s751_s2 }
  0xe6   : > { %p501_p13 = scmp.lt.s32.totalorder %s499_s30, %s495_s26 }
  0xe7   : > { %p497_p10 = pnand %p496_p9, %p645_p3 }
  0xe8   : > { %p502_p0 = por %p501_p13, %p500_p12 }
  0xe9   : > { %p498_p11 = pneg %p497_p10 }
  0xeb   : > { %p503_p1 = pnand %p502_p0, %p498_p11 }
  0xed   : > { %506 = shalt.err (!%p503_p1)
}
  0xee   : > { %s576_s5 = smov 128   ;;  %s577_s7 = smov 256  }
  0xef   : > { %s578_s8 = smov 8  }
  0xf0   : > { %407 = dma.vmem_to_hbm [thread:$0]  (%p645_p3), %s691_s6, 512, %s696_s18, %s698_s12, %s576_s5, %s577_s7, %s578_s8  }
  0xf1 PF: > { %p413_p2 = scmp.ge.s32.totalorder %s573_s16, 2  ;;  %s308_s17 = sand.u32 1, %s545_s9  }
  0xf2   : > { %s309_s13 = scalar_lea.sflag [#allocation3], %s308_s17 }
  0xf3   : > { %p410_p4 = pnand %p413_p2, %p654_p8 }
  0xf5   : > { %p411_p5 = pneg %p410_p4 }
  0xf7   : > { %540 = dma.done.wait (%p411_p5), %s309_s13, 512  }
  0xf8   : > { %542 = vsyncadd (%p411_p5), %s309_s13, 4294966784  ;;  %s15_s16 = sadd.s32 1, %s573_s16   ;;  %s754_s9 = smov %s549_s10 }
  0xf9   : > { %p12_p6 = scmp.ge.s32.totalorder %s15_s16, 6   ;;  %s755_s10 = smov %s553_s11 }
  0xfa   : > { %s756_s11 = smov %s663_s27  ;;  %s757_s12 = smov %s565_s14 }
  0xfb   : > { %s758_s13 = smov %s569_s15  ;;  %s759_s14 = smov %s762_s19 }
  0xfc   : > { %s760_s15 = smov %s766_s20  ;;  %14 = sbr.rel (!%p12_p6) target bundleno = 5 (0x5), region = 63 }
 0x101   :  { %314 = vsyncpa [#allocation3], 1 }
 0x102   :  { %316 = vsyncpa [#allocation3 + $0x1], 1 }

</bundles_post_ra>
